<compile_context>
chip_gen: v7x
topology: tpu7x:2x2x1
jax: 0.10.0
libtpu: 0.0.40
codegen_flags: <defaults>
</compile_context>

<pallas_src>
import jax
import jax.numpy as jnp
from jax.experimental import pallas as pl
from jax.experimental.pallas import tpu as pltpu

BN_EPS = 1e-5


def convbr_forward(x_nchw, weight_oihw, bias, gamma, beta):
    """ConvBR forward: conv3x3(s1,p1) + train-mode BN + ReLU.

    x_nchw: (N, Cin, H, W) float32 -> (N, Cout, H, W) float32.
    """
    N, Cin, H, W = x_nchw.shape
    Cout, _, KH, KW = weight_oihw.shape
    ph, pw = KH // 2, KW // 2
    Hp, Wp = H + 2 * ph, W + 2 * pw
    WPC = Wp * Cin          # packed input lane width
    WC = W * Cout           # packed output lane width (128 here -> lane-dense)
    inv_cnt = 1.0 / float(N * H * W)
    # A per-channel constant added before train-mode BN is exactly cancelled by
    # the mean subtraction (the f32 reference keeps the bias, proving it).
    del bias

    # ---- wrapper-side layout: NCHW -> NHWC -> pad -> pack (W,Cin) on lanes ----
    x_pack = jnp.pad(
        jnp.transpose(x_nchw.astype(jnp.float32), (0, 2, 3, 1)),
        ((0, 0), (ph, ph), (pw, pw), (0, 0)),
    ).reshape(N, Hp, WPC).astype(jnp.bfloat16)

    # Banded conv weight via one-hot band einsum (vectorized, no scatter loop):
    # wb[dy, wp*Cin+ci, w*Cout+co] = weight[co, ci, dy, wp-w] for 0 <= wp-w < KW.
    w_hw = jnp.transpose(weight_oihw.astype(jnp.float32), (2, 3, 1, 0))   # (KH,KW,Cin,Cout)
    band = (jnp.arange(Wp)[None, :, None] - jnp.arange(W)[None, None, :]
            == jnp.arange(KW)[:, None, None]).astype(jnp.float32)          # (KW,Wp,W)
    wb = jnp.einsum("kxio,xpw->kpiwo", w_hw, band).reshape(KH, WPC, WC)
    wb = wb.astype(jnp.bfloat16)

    # Channel-equality matrix on packed lanes: chmat[j, j'] = (j%Cout == j'%Cout).
    # stats(2,WC) @ chmat reduces over w AND broadcasts the per-channel totals
    # back to every (w, cout) lane in a single MXU matmul.
    ch = jnp.arange(WC) % Cout
    chmat = (ch[:, None] == ch[None, :]).astype(jnp.float32)               # (WC, WC)

    gamma_p = jnp.tile(gamma.astype(jnp.float32), W)[None, :]              # (1, WC)
    beta_p = jnp.tile(beta.astype(jnp.float32), W)[None, :]                # (1, WC)

    def kernel(x_ref, wb_ref, cm_ref, g_ref, b_ref, o_ref, stats_ref):
        phase = pl.program_id(0)    # 0: accumulate BN stats, 1: normalize+write
        img = pl.program_id(1)

        # 3x3 conv = KH banded MXU matmuls (H, Wp*Cin) @ (Wp*Cin, W*Cout),
        # bf16 inputs, f32 accumulation.
        acc = jnp.dot(x_ref[0, 0:H, :], wb_ref[0],
                      preferred_element_type=jnp.float32)
        for dy in range(1, KH):                                 # static, unrolled
            acc = acc + jnp.dot(x_ref[0, dy:dy + H, :], wb_ref[dy],
                                preferred_element_type=jnp.float32)

        @pl.when((phase == 0) & (img == 0))
        def _():
            stats_ref[...] = jnp.zeros_like(stats_ref)

        @pl.when(phase == 0)
        def _():
            stats_ref[...] = stats_ref[...] + jnp.concatenate(
                [jnp.sum(acc, axis=0, keepdims=True),
                 jnp.sum(acc * acc, axis=0, keepdims=True)], axis=0)

        @pl.when(phase == 1)
        def _():
            # Per-channel totals broadcast back to packed lanes in one matmul.
            tot = jnp.dot(stats_ref[...], cm_ref[...],
                          preferred_element_type=jnp.float32)   # (2, WC)
            mean = tot[0:1] * inv_cnt
            var = tot[1:2] * inv_cnt - mean * mean
            inv_std = jax.lax.rsqrt(var + BN_EPS)
            scale = g_ref[...] * inv_std                        # (1, WC)
            shift = b_ref[...] - mean * scale                   # (1, WC)
            o_ref[0] = jnp.maximum(acc * scale + shift, 0.0).astype(o_ref.dtype)

    out_pack = pl.pallas_call(
        kernel,
        out_shape=jax.ShapeDtypeStruct((N, H, WC), jnp.float32),
        grid_spec=pltpu.PrefetchScalarGridSpec(
            num_scalar_prefetch=0,
            grid=(2, N),                 # phase OUTERMOST: all stats steps first
            in_specs=[
                pl.BlockSpec((1, Hp, WPC), lambda p, n: (n, 0, 0)),
                pl.BlockSpec((KH, WPC, WC), lambda p, n: (0, 0, 0)),
                pl.BlockSpec((WC, WC), lambda p, n: (0, 0)),
                pl.BlockSpec((1, WC), lambda p, n: (0, 0)),
                pl.BlockSpec((1, WC), lambda p, n: (0, 0)),
            ],
            # n*p: during phase 0 every step maps to (never-written) block 0, so
            # the only HBM output writebacks are the N real phase-1 blocks.
            out_specs=pl.BlockSpec((1, H, WC), lambda p, n: (n * p, 0, 0)),
            scratch_shapes=[pltpu.VMEM((2, WC), jnp.float32)],
        ),
        compiler_params=pltpu.CompilerParams(
            # Cross-step scratch accumulation -> both axes sequential.
            dimension_semantics=("arbitrary", "arbitrary"),
            # Footprint is ~0.5 MiB; 32 MiB is safe on every generation
            # including v7x (64 MiB physical VMEM per TensorCore).
            vmem_limit_bytes=32 * 1024 * 1024,
        ),
    )(x_pack, wb, chmat, gamma_p, beta_p)

    # Unpack lanes -> (N, H, W, Cout) -> NCHW (kept in the wrapper so kernel
    # stores stay lane-dense at W*Cout = 128).
    return jnp.transpose(out_pack.reshape(N, H, W, Cout), (0, 3, 1, 2))


def _reference(x_nchw, weight_oihw, bias, gamma, beta):
    """Pure-JAX f32 reference (conv+bias + train-mode BN + relu)."""
    y = jax.lax.conv_general_dilated(
        x_nchw, weight_oihw,
        window_strides=(1, 1), padding="SAME",
        dimension_numbers=("NCHW", "OIHW", "NCHW"),
    ) + bias[None, :, None, None]
    mean = jnp.mean(y, axis=(0, 2, 3), keepdims=True)
    var = jnp.mean((y - mean) ** 2, axis=(0, 2, 3), keepdims=True)
    y = (y - mean) * jax.lax.rsqrt(var + BN_EPS)
    y = y * gamma[None, :, None, None] + beta[None, :, None, None]
    return jnp.maximum(y, 0.0)


if __name__ == "__main__":
    # ConvBR(in_channels=4, out_channels=8) at small shapes.
    N, Cin, H, W = 2, 4, 16, 16
    Cout, KH, KW = 8, 3, 3

    key = jax.random.PRNGKey(0)
    k_x, k_w, k_b = jax.random.split(key, 3)

    x = jax.random.normal(k_x, (N, Cin, H, W), dtype=jnp.float32)

    # Deterministic init mirroring ConvBR._initialize_weights:
    #  - conv weight: kaiming_normal_(mode='fan_out', nonlinearity='relu')
    #  - conv bias:   PyTorch default uniform(-1/sqrt(fan_in), 1/sqrt(fan_in))
    #  - BN weight=1, BN bias=0
    fan_out = Cout * KH * KW
    w_std = (2.0 / fan_out) ** 0.5
    weight = w_std * jax.random.normal(k_w, (Cout, Cin, KH, KW), dtype=jnp.float32)
    fan_in = Cin * KH * KW
    bound = 1.0 / (fan_in ** 0.5)
    bias = jax.random.uniform(k_b, (Cout,), minval=-bound, maxval=bound,
                              dtype=jnp.float32)
    gamma = jnp.ones((Cout,), jnp.float32)
    beta = jnp.zeros((Cout,), jnp.float32)

    fwd = jax.jit(convbr_forward)
    out = jax.block_until_ready(fwd(x, weight, bias, gamma, beta))

    ref = jax.block_until_ready(_reference(x, weight, bias, gamma, beta))
    assert out.shape == (N, Cout, H, W)
    # bf16 MXU inputs (f32 accumulation) introduce ~0.2-0.5% relative error on
    # the conv output vs. the pure-f32 reference; tolerance set accordingly
    # (the earlier all-f32 version met 1e-3).
    assert jnp.allclose(out, ref, atol=2e-2, rtol=2e-2), "mismatch vs reference"

    print("KERNEL_OK")
</pallas_src>

<mosaic_0001>
module attributes {stable_mosaic.version = 11 : i64} {
  func.func @kernel(%arg0: i32, %arg1: i32, %arg2: memref<1x18x72xbf16, #tpu.memory_space<vmem>>, %arg3: memref<3x72x128xbf16, #tpu.memory_space<vmem>>, %arg4: memref<128x128xf32, #tpu.memory_space<vmem>>, %arg5: memref<1x128xf32, #tpu.memory_space<vmem>>, %arg6: memref<1x128xf32, #tpu.memory_space<vmem>>, %arg7: memref<1x16x128xf32, #tpu.memory_space<vmem>>, %arg8: memref<2x128xf32, #tpu.memory_space<vmem>>) attributes {dimension_semantics = [#tpu.dimension_semantics<arbitrary>, #tpu.dimension_semantics<arbitrary>], iteration_bounds = array<i64: 2, 2>, scalar_prefetch = 0 : i64, scratch_operands = 1 : i64, tpu.core_type = #tpu.core_type<tc>, window_params = [{transform_indices = @transform_0, window_bounds = array<i64: 1, 18, 72>}, {pipeline_mode = #tpu.pipeline_mode<synchronous>, transform_indices = @transform_1, window_bounds = array<i64: 3, 72, 128>}, {pipeline_mode = #tpu.pipeline_mode<synchronous>, transform_indices = @transform_2, window_bounds = array<i64: 128, 128>}, {pipeline_mode = #tpu.pipeline_mode<synchronous>, transform_indices = @transform_3, window_bounds = array<i64: 1, 128>}, {pipeline_mode = #tpu.pipeline_mode<synchronous>, transform_indices = @transform_4, window_bounds = array<i64: 1, 128>}, {transform_indices = @transform_5, window_bounds = array<i64: 1, 16, 128>}]} {
    %c0 = arith.constant 0 : index
    %c0_0 = arith.constant 0 : index
    %c0_1 = arith.constant 0 : index
    %0 = vector.load %arg2[%c0, %c0_0, %c0_1] : memref<1x18x72xbf16, #tpu.memory_space<vmem>>, vector<1x16x72xbf16>
    %1 = vector.shape_cast %0 : vector<1x16x72xbf16> to vector<16x72xbf16>
    %c0_2 = arith.constant 0 : index
    %c0_3 = arith.constant 0 : index
    %c0_4 = arith.constant 0 : index
    %2 = vector.load %arg3[%c0_2, %c0_3, %c0_4] : memref<3x72x128xbf16, #tpu.memory_space<vmem>>, vector<1x72x128xbf16>
    %3 = vector.shape_cast %2 : vector<1x72x128xbf16> to vector<72x128xbf16>
    %cst = arith.constant dense<0.000000e+00> : vector<16x128xf32>
    %4 = tpu.matmul %1, %3, %cst {dimension_numbers = #tpu.dot_dimension_numbers<[1], [0], [0], [1], [0, 0, 1, 1], [], []>} : vector<16x72xbf16>, vector<72x128xbf16>, vector<16x128xf32> -> vector<16x128xf32>
    %c0_5 = arith.constant 0 : index
    %c1 = arith.constant 1 : index
    %c0_6 = arith.constant 0 : index
    %5 = vector.load %arg2[%c0_5, %c1, %c0_6] : memref<1x18x72xbf16, #tpu.memory_space<vmem>>, vector<1x16x72xbf16>
    %6 = vector.shape_cast %5 : vector<1x16x72xbf16> to vector<16x72xbf16>
    %c1_7 = arith.constant 1 : index
    %c0_8 = arith.constant 0 : index
    %c0_9 = arith.constant 0 : index
    %7 = vector.load %arg3[%c1_7, %c0_8, %c0_9] : memref<3x72x128xbf16, #tpu.memory_space<vmem>>, vector<1x72x128xbf16>
    %8 = vector.shape_cast %7 : vector<1x72x128xbf16> to vector<72x128xbf16>
    %cst_10 = arith.constant dense<0.000000e+00> : vector<16x128xf32>
    %9 = tpu.matmul %6, %8, %cst_10 {dimension_numbers = #tpu.dot_dimension_numbers<[1], [0], [0], [1], [0, 0, 1, 1], [], []>} : vector<16x72xbf16>, vector<72x128xbf16>, vector<16x128xf32> -> vector<16x128xf32>
    %10 = arith.addf %4, %9 : vector<16x128xf32>
    %c0_11 = arith.constant 0 : index
    %c2 = arith.constant 2 : index
    %c0_12 = arith.constant 0 : index
    %11 = vector.load %arg2[%c0_11, %c2, %c0_12] : memref<1x18x72xbf16, #tpu.memory_space<vmem>>, vector<1x16x72xbf16>
    %12 = vector.shape_cast %11 : vector<1x16x72xbf16> to vector<16x72xbf16>
    %c2_13 = arith.constant 2 : index
    %c0_14 = arith.constant 0 : index
    %c0_15 = arith.constant 0 : index
    %13 = vector.load %arg3[%c2_13, %c0_14, %c0_15] : memref<3x72x128xbf16, #tpu.memory_space<vmem>>, vector<1x72x128xbf16>
    %14 = vector.shape_cast %13 : vector<1x72x128xbf16> to vector<72x128xbf16>
    %cst_16 = arith.constant dense<0.000000e+00> : vector<16x128xf32>
    %15 = tpu.matmul %12, %14, %cst_16 {dimension_numbers = #tpu.dot_dimension_numbers<[1], [0], [0], [1], [0, 0, 1, 1], [], []>} : vector<16x72xbf16>, vector<72x128xbf16>, vector<16x128xf32> -> vector<16x128xf32>
    %16 = arith.addf %10, %15 : vector<16x128xf32>
    %c0_i32 = arith.constant 0 : i32
    %17 = arith.cmpi eq, %arg0, %c0_i32 : i32
    %c0_i32_17 = arith.constant 0 : i32
    %18 = arith.cmpi eq, %arg1, %c0_i32_17 : i32
    %19 = arith.andi %17, %18 : i1
    %20 = arith.extui %19 : i1 to i32
    %c0_i32_18 = arith.constant 0 : i32
    %21 = arith.cmpi ne, %20, %c0_i32_18 : i32
    scf.if %21 {
      %cst_22 = arith.constant 0.000000e+00 : f32
      %28 = vector.broadcast %cst_22 : f32 to vector<2x128xf32>
      %c0_23 = arith.constant 0 : index
      %c0_24 = arith.constant 0 : index
      %29 = vector.load %arg8[%c0_23, %c0_24] : memref<2x128xf32, #tpu.memory_space<vmem>>, vector<2x128xf32>
      tpu.vector_store %arg8[%c0_23, %c0_24], %28 {strides = array<i32>} : memref<2x128xf32, #tpu.memory_space<vmem>>, vector<2x128xf32>,
    } else {
    }
    %c0_i32_19 = arith.constant 0 : i32
    %22 = arith.cmpi eq, %arg0, %c0_i32_19 : i32
    %23 = arith.extui %22 : i1 to i32
    %c0_i32_20 = arith.constant 0 : i32
    %24 = arith.cmpi ne, %23, %c0_i32_20 : i32
    scf.if %24 {
      %c0_22 = arith.constant 0 : index
      %c0_23 = arith.constant 0 : index
      %28 = vector.load %arg8[%c0_22, %c0_23] : memref<2x128xf32, #tpu.memory_space<vmem>>, vector<2x128xf32>
      %cst_24 = arith.constant dense<0.000000e+00> : vector<128xf32>
      %29 = vector.multi_reduction <add>, %16, %cst_24 [0] : vector<16x128xf32> to vector<128xf32>
      %30 = vector.shape_cast %29 : vector<128xf32> to vector<1x128xf32>
      %31 = arith.mulf %16, %16 : vector<16x128xf32>
      %cst_25 = arith.constant dense<0.000000e+00> : vector<128xf32>
      %32 = vector.multi_reduction <add>, %31, %cst_25 [0] : vector<16x128xf32> to vector<128xf32>
      %33 = vector.shape_cast %32 : vector<128xf32> to vector<1x128xf32>
      %34 = tpu.concatenate %30, %33 in 0 : vector<1x128xf32>, vector<1x128xf32> -> vector<2x128xf32>
      %35 = arith.addf %28, %34 : vector<2x128xf32>
      %c0_26 = arith.constant 0 : index
      %c0_27 = arith.constant 0 : index
      %36 = vector.load %arg8[%c0_26, %c0_27] : memref<2x128xf32, #tpu.memory_space<vmem>>, vector<2x128xf32>
      tpu.vector_store %arg8[%c0_26, %c0_27], %35 {strides = array<i32>} : memref<2x128xf32, #tpu.memory_space<vmem>>, vector<2x128xf32>,
    } else {
    }
    %c1_i32 = arith.constant 1 : i32
    %25 = arith.cmpi eq, %arg0, %c1_i32 : i32
    %26 = arith.extui %25 : i1 to i32
    %c0_i32_21 = arith.constant 0 : i32
    %27 = arith.cmpi ne, %26, %c0_i32_21 : i32
    scf.if %27 {
      %c0_22 = arith.constant 0 : index
      %c0_23 = arith.constant 0 : index
      %28 = vector.load %arg8[%c0_22, %c0_23] : memref<2x128xf32, #tpu.memory_space<vmem>>, vector<2x128xf32>
      %c0_24 = arith.constant 0 : index
      %c0_25 = arith.constant 0 : index
      %29 = vector.load %arg4[%c0_24, %c0_25] : memref<128x128xf32, #tpu.memory_space<vmem>>, vector<128x128xf32>
      %cst_26 = arith.constant dense<0.000000e+00> : vector<2x128xf32>
      %30 = tpu.matmul %28, %29, %cst_26 {dimension_numbers = #tpu.dot_dimension_numbers<[1], [0], [0], [1], [0, 0, 1, 1], [], []>} : vector<2x128xf32>, vector<128x128xf32>, vector<2x128xf32> -> vector<2x128xf32>
      %31 = vector.extract_strided_slice %30 {offsets = [0, 0], sizes = [1, 128], strides = [1, 1]} : vector<2x128xf32> to vector<1x128xf32>
      %cst_27 = arith.constant 0.001953125 : f32
      %32 = vector.broadcast %cst_27 : f32 to vector<1x128xf32>
      %33 = arith.mulf %31, %32 : vector<1x128xf32>
      %34 = vector.extract_strided_slice %30 {offsets = [1, 0], sizes = [1, 128], strides = [1, 1]} : vector<2x128xf32> to vector<1x128xf32>
      %cst_28 = arith.constant 0.001953125 : f32
      %35 = vector.broadcast %cst_28 : f32 to vector<1x128xf32>
      %36 = arith.mulf %34, %35 : vector<1x128xf32>
      %37 = arith.mulf %33, %33 : vector<1x128xf32>
      %38 = arith.subf %36, %37 : vector<1x128xf32>
      %cst_29 = arith.constant 9.99999974E-6 : f32
      %39 = vector.broadcast %cst_29 : f32 to vector<1x128xf32>
      %40 = arith.addf %38, %39 : vector<1x128xf32>
      %41 = math.rsqrt %40 : vector<1x128xf32>
      %c0_30 = arith.constant 0 : index
      %c0_31 = arith.constant 0 : index
      %42 = vector.load %arg5[%c0_30, %c0_31] : memref<1x128xf32, #tpu.memory_space<vmem>>, vector<1x128xf32>
      %43 = arith.mulf %42, %41 : vector<1x128xf32>
      %c0_32 = arith.constant 0 : index
      %c0_33 = arith.constant 0 : index
      %44 = vector.load %arg6[%c0_32, %c0_33] : memref<1x128xf32, #tpu.memory_space<vmem>>, vector<1x128xf32>
      %45 = arith.mulf %33, %43 : vector<1x128xf32>
      %46 = arith.subf %44, %45 : vector<1x128xf32>
      %47 = vector.broadcast %43 : vector<1x128xf32> to vector<16x128xf32>
      %48 = arith.mulf %16, %47 : vector<16x128xf32>
      %49 = vector.broadcast %46 : vector<1x128xf32> to vector<16x128xf32>
      %50 = arith.addf %48, %49 : vector<16x128xf32>
      %cst_34 = arith.constant 0.000000e+00 : f32
      %51 = vector.broadcast %cst_34 : f32 to vector<16x128xf32>
      %52 = arith.maximumf %50, %51 : vector<16x128xf32>
      %c0_35 = arith.constant 0 : index
      %c0_36 = arith.constant 0 : index
      %c0_37 = arith.constant 0 : index
      %53 = vector.load %arg7[%c0_35, %c0_36, %c0_37] : memref<1x16x128xf32, #tpu.memory_space<vmem>>, vector<1x16x128xf32>
      %54 = vector.shape_cast %53 : vector<1x16x128xf32> to vector<16x128xf32>
      %55 = vector.shape_cast %52 : vector<16x128xf32> to vector<1x16x128xf32>
      tpu.vector_store %arg7[%c0_35, %c0_36, %c0_37], %55 {strides = array<i32>} : memref<1x16x128xf32, #tpu.memory_space<vmem>>, vector<1x16x128xf32>,
    } else {
    }
    return
  }
  func.func @transform_0(%arg0: i32, %arg1: i32) -> (i32, i32, i32) {
    %c0_i32 = arith.constant 0 : i32
    %c0_i32_0 = arith.constant 0 : i32
    %c0_i32_1 = arith.constant 0 : i32
    return %arg1, %c0_i32, %c0_i32_0 : i32, i32, i32
  }
  func.func @transform_1(%arg0: i32, %arg1: i32) -> (i32, i32, i32) {
    %c0_i32 = arith.constant 0 : i32
    %c0_i32_0 = arith.constant 0 : i32
    %c0_i32_1 = arith.constant 0 : i32
    %c0_i32_2 = arith.constant 0 : i32
    return %c0_i32, %c0_i32_0, %c0_i32_1 : i32, i32, i32
  }
  func.func @transform_2(%arg0: i32, %arg1: i32) -> (i32, i32) {
    %c0_i32 = arith.constant 0 : i32
    %c0_i32_0 = arith.constant 0 : i32
    %c0_i32_1 = arith.constant 0 : i32
    return %c0_i32, %c0_i32_0 : i32, i32
  }
  func.func @transform_3(%arg0: i32, %arg1: i32) -> (i32, i32) {
    %c0_i32 = arith.constant 0 : i32
    %c0_i32_0 = arith.constant 0 : i32
    %c0_i32_1 = arith.constant 0 : i32
    return %c0_i32, %c0_i32_0 : i32, i32
  }
  func.func @transform_4(%arg0: i32, %arg1: i32) -> (i32, i32) {
    %c0_i32 = arith.constant 0 : i32
    %c0_i32_0 = arith.constant 0 : i32
    %c0_i32_1 = arith.constant 0 : i32
    return %c0_i32, %c0_i32_0 : i32, i32
  }
  func.func @transform_5(%arg0: i32, %arg1: i32) -> (i32, i32, i32) {
    %0 = arith.muli %arg1, %arg0 : i32
    %c0_i32 = arith.constant 0 : i32
    %c0_i32_0 = arith.constant 0 : i32
    %c0_i32_1 = arith.constant 0 : i32
    return %0, %c0_i32, %c0_i32_0 : i32, i32, i32
  }
}

</mosaic_0001>

<bundles_post_ra>
// kernel: tile.13
= control target key start
LH: loop header
LB: loop body
LE: loop exit
PB: predicated region body
PF: predicated region fallthrough
CT: control target
= control target key end

     0   :  { %s28_s0 = inlined_call_operand.vmem [shape: f32[8], index: 0, kind: input, shape index: {}]   ;;  %s29_s1 = inlined_call_operand.vmem [shape: f32[16,8], index: 1, kind: output, shape index: {}]  }
   0x1   :  { %v4_v0 = vld [vmem:[%s28_s0] ss:$0 sm:$0xff] }
   0x2   :  { %5 = vst [vmem:[%s29_s1] sm:$0xff] %v4_v0  ;;  %8 = vst [vmem:[%s29_s1 + $0x8] sm:$0xff] %v4_v0 }

// kernel: tile.14
= control target key start
LH: loop header
LB: loop body
LE: loop exit
PB: predicated region body
PF: predicated region fallthrough
CT: control target
= control target key end

     0   :  { %s131_s10 = smov 120   ;;  %s132_s11 = smov 104   ;;  %vm3_vm0 = vcmask 64512   ;;  %vm9_vm1 = vcmask 1048512   ;;  %vm15_vm2 = vcmask 982912   ;;  %vm21_vm3 = vcmask 917312   ;;  %s207_s0 = inlined_call_operand.vmem [shape: f32[16,8], index: 0, kind: input, shape index: {}]   ;;  %s208_s1 = inlined_call_operand.vmem [shape: f32[1,128], index: 1, kind: output, shape index: {}]  }
   0x1   :  { %v101_v0 = vld [vmem:[%s207_s0 + $0xf] sm:$0x1]   ;;  %v103_v1 = vld [vmem:[%s207_s0 + $0xd] sm:$0x1]   ;;  %v102_v2 = vld [vmem:[%s207_s0 + $0xe] sm:$0x1]  }
   0x2   :  { %7 = vrot.lane.b32.xlu0 %v101_v0, %s131_s10  ;;  %19 = vrot.lane.b32.xlu1 %v103_v1, %s132_s11  ;;  %v104_v3 = vld [vmem:[%s207_s0 + $0xc] sm:$0x1]   ;;  %s133_s16 = smov 112   ;;  %s134_s17 = smov 96   ;;  %v105_v4 = vld [vmem:[%s207_s0 + $0xb] sm:$0x1]  }
   0x3   :  { %v106_v5 = vld [vmem:[%s207_s0 + $0xa] sm:$0x1]   ;;  %v2_v6 = vld [vmem:[%s207_s0] sm:$0x1]   ;;  %s135_s24 = smov 88   ;;  %s136_s25 = smov 80  }
   0x4   :  { %4 = vst.msk [vmem:[#allocation0] sm:$0x1] %vm3_vm0, %v2_v6   ;;  %v107_v7 = vld [vmem:[%s207_s0 + $0x9] sm:$0x1]   ;;  %v108_v8 = vld [vmem:[%s207_s0 + $0x8] sm:$0x1]  }
   0x5   :  { %s137_s30 = smov 72   ;;  %s138_s2 = smov 64   ;;  %v109_v9 = vld [vmem:[%s207_s0 + $0x7] sm:$0x1]   ;;  %v110_v10 = vld [vmem:[%s207_s0 + $0x6] sm:$0x1]  }
   0x6   :  { %13 = vrot.lane.b32.xlu0 %v102_v2, %s133_s16  ;;  %25 = vrot.lane.b32.xlu1 %v104_v3, %s134_s17  ;;  %s139_s7 = smov 56   ;;  %s140_s8 = smov 48   ;;  %v111_v11 = vld [vmem:[%s207_s0 + $0x5] sm:$0x1]   ;;  %v112_v12 = vld [vmem:[%s207_s0 + $0x4] sm:$0x1]  }
   0x7   :  { %s141_s13 = smov 40   ;;  %s142_s14 = smov 32   ;;  %v113_v13 = vld [vmem:[%s207_s0 + $0x3] sm:$0x1]   ;;  %v114_v14 = vld [vmem:[%s207_s0 + $0x2] sm:$0x1]  }
   0x8   :  { %s143_s19 = smov 24   ;;  %s144_s20 = smov 16   ;;  %v115_v15 = vld [vmem:[%s207_s0 + $0x1] sm:$0x1]   ;;  %vm27_vm4 = vcmask 851712   ;;  %vm33_vm5 = vcmask 786112  }
   0x9   :  { %s145_s0 = smov 8   ;;  %vm39_vm6 = vcmask 720512   ;;  %vm45_vm7 = vcmask 654912   ;;  %vm51_vm8 = vcmask 589312   ;;  %vm57_vm9 = vcmask 523712  }
   0xa   :  { %31 = vrot.lane.b32.xlu0 %v105_v4, %s135_s24  ;;  %37 = vrot.lane.b32.xlu1 %v106_v5, %s136_s25  ;;  %vm63_vm10 = vcmask 458112   ;;  %vm69_vm11 = vcmask 392512   ;;  %vm75_vm12 = vcmask 326912   ;;  %vm81_vm13 = vcmask 261312  }
   0xb   :  { %vm87_vm14 = vcmask 195712   ;;  %vm93_vm15 = vcmask 130112  }
   0xe   :  { %43 = vrot.lane.b32.xlu0 %v107_v7, %s137_s30  ;;  %49 = vrot.lane.b32.xlu1 %v108_v8, %s138_s2 }
  0x12   :  { %55 = vrot.lane.b32.xlu0 %v109_v9, %s139_s7  ;;  %61 = vrot.lane.b32.xlu1 %v110_v10, %s140_s8 }
  0x16   :  { %67 = vrot.lane.b32.xlu0 %v111_v11, %s141_s13  ;;  %73 = vrot.lane.b32.xlu1 %v112_v12, %s142_s14 }
  0x1a   :  { %79 = vrot.lane.b32.xlu0 %v113_v13, %s143_s19  ;;  %85 = vrot.lane.b32.xlu1 %v114_v14, %s144_s20 }
  0x1e   :  { %91 = vrot.lane.b32.xlu0 %v115_v15, %s145_s0 }
  0x74   :  { %v8_v16 = vpop.permute.xlu0 %7   ;;  %v20_v17 = vpop.permute.xlu1 %19  }
  0x75   :  { %10 = vst.msk [vmem:[#allocation0] sm:$0x1] %vm9_vm1, %v8_v16  }
  0x78   :  { %v14_v18 = vpop.permute.xlu0 %13   ;;  %v26_v19 = vpop.permute.xlu1 %25  }
  0x79   :  { %16 = vst.msk [vmem:[#allocation0] sm:$0x1] %vm15_vm2, %v14_v18  }
  0x7a   :  { %22 = vst.msk [vmem:[#allocation0] sm:$0x1] %vm21_vm3, %v20_v17  }
  0x7b   :  { %28 = vst.msk [vmem:[#allocation0] sm:$0x1] %vm27_vm4, %v26_v19  }
  0x7c   :  { %v32_v20 = vpop.permute.xlu0 %31   ;;  %v38_v21 = vpop.permute.xlu1 %37  }
  0x7d   :  { %34 = vst.msk [vmem:[#allocation0] sm:$0x1] %vm33_vm5, %v32_v20  }
  0x7e   :  { %40 = vst.msk [vmem:[#allocation0] sm:$0x1] %vm39_vm6, %v38_v21  }
  0x80   :  { %v44_v22 = vpop.permute.xlu0 %43   ;;  %v50_v23 = vpop.permute.xlu1 %49  }
  0x81   :  { %46 = vst.msk [vmem:[#allocation0] sm:$0x1] %vm45_vm7, %v44_v22  }
  0x82   :  { %52 = vst.msk [vmem:[#allocation0] sm:$0x1] %vm51_vm8, %v50_v23  }
  0x84   :  { %v56_v24 = vpop.permute.xlu0 %55   ;;  %v62_v25 = vpop.permute.xlu1 %61  }
  0x85   :  { %58 = vst.msk [vmem:[#allocation0] sm:$0x1] %vm57_vm9, %v56_v24  }
  0x86   :  { %64 = vst.msk [vmem:[#allocation0] sm:$0x1] %vm63_vm10, %v62_v25  }
  0x88   :  { %v68_v26 = vpop.permute.xlu0 %67   ;;  %v74_v27 = vpop.permute.xlu1 %73  }
  0x89   :  { %70 = vst.msk [vmem:[#allocation0] sm:$0x1] %vm69_vm11, %v68_v26  }
  0x8a   :  { %76 = vst.msk [vmem:[#allocation0] sm:$0x1] %vm75_vm12, %v74_v27  }
  0x8c   :  { %v80_v28 = vpop.permute.xlu0 %79   ;;  %v86_v29 = vpop.permute.xlu1 %85  }
  0x8d   :  { %82 = vst.msk [vmem:[#allocation0] sm:$0x1] %vm81_vm13, %v80_v28  }
  0x8e   :  { %88 = vst.msk [vmem:[#allocation0] sm:$0x1] %vm87_vm14, %v86_v29  }
  0x90   :  { %v92_v30 = vpop.permute.xlu0 %91  }
  0x91   :  { %94 = vst.msk [vmem:[#allocation0] sm:$0x1] %vm93_vm15, %v92_v30  }
  0x98   :  { %v98_v31 = vld [vmem:[#allocation0] sm:$0x1] }
  0x99   :  { %100 = vst [vmem:[%s208_s1] sm:$0x1] %v98_v31 }

// kernel: convbr_forward.1
= control target key start
LH: loop header
LB: loop body
LE: loop exit
PB: predicated region body
PF: predicated region fallthrough
CT: control target
= control target key end

     0   :  { %s1110_s18 = smov 0   ;;  %s1112_s19 = smov 0   ;;  %s1321_s0 = inlined_call_operand.vmem [shape: bf16[2,18,72], index: 0, kind: input, shape index: {}]   ;;  %s1322_s1 = inlined_call_operand.vmem [shape: bf16[3,72,128], index: 1, kind: input, shape index: {}]   ;;  %s1323_s2 = inlined_call_operand.vmem [shape: f32[128,128], index: 2, kind: input, shape index: {}]   ;;  %s1324_s3 = inlined_call_operand.vmem [shape: f32[1,128], index: 3, kind: input, shape index: {}]   ;;  %s1325_s4 = inlined_call_operand.vmem [shape: f32[1,128], index: 4, kind: input, shape index: {}]   ;;  %s1326_s5 = inlined_call_operand.vmem [shape: f32[2,16,128], index: 5, kind: output, shape index: {}]  }
   0x1   :  { %s1114_s20 = smov 0   ;;  %s1116_s21 = smov 0  }
   0x2   :  { %s1118_s22 = smov 0  }
   0x3 LB: > { %s24_s23 = sadd.s32 1, %s1063_s20  ;;  %s27_s24 = sadd.s32 1, %s1067_s21  ;;  %s1071_s22 = sphi %s1118_s22, %s15_s22   ;;  %s1067_s21 = sphi %s1116_s21, %s1330_s21   ;;  %s1063_s20 = sphi %s1114_s20, %s1329_s20   ;;  %s1059_s19 = sphi %s1112_s19, %s1328_s19   ;;  %s1055_s18 = sphi %s1110_s18, %s1327_s18  }
   0x4   : > { %p25_p0 = scmp.ge.s32.totalorder %s24_s23, 2  ;;  %p775_p1 = scmp.ge.s32.totalorder %s1071_s22, 1 }
   0x5   : > { %p201_p2 = scmp.lt.s32.totalorder %s1071_s22, 5 }
   0x6   : > { %s1332_s23 = smov (%p25_p0, %s24_s23), 0  ;;  %s1334_s24 = smov (!%p25_p0, %s27_s24), %s1067_s21 }
   0x7   : > { %p202_p3 = pnand %p775_p1, %p201_p2  ;;  %p29_p4 = scmp.ge.s32.totalorder %s1334_s24, 2 }
   0x8   : > { %v1013_v0 = vld [vmem:[%s1322_s1] sm:$0xff] (!%p202_p3)   ;;  %s235_s27 = smul.u32 (!%p202_p3), %s1055_s18, %s1059_s19  ;;  %v1073_v1 = vmov (!%p202_p3), 0.0   ;;  %v1014_v2 = vld [vmem:[%s1322_s1 + $0x8] sm:$0xff] (!%p202_p3)   ;;  %vm1074_vm0 = vmmov (!%p202_p3), 0   ;;  %p230_p6 = scmp.lt.s32.totalorder (!%p202_p3), %s1055_s18, 1  ;;  %v1015_v4 = vld [vmem:[%s1322_s1 + $0x10] sm:$0xff] (!%p202_p3)  }
   0x9   : > { %s1336_s24 = smov (%p29_p4, %s1334_s24), 0  ;;  %205 = sbr.rel (%p202_p3) target bundleno = 573 (0x23d), region = 40 }
   0xa   : > { %872 = vmatprep.subr.bf16.mxu0 (!%p202_p3), %v1073_v1  ;;  %858 = vmatprep.subr.bf16.mxu1 (!%p202_p3), %v1073_v1  ;;  %p236_p5 = scmp.lt.s32.totalorder (!%p202_p3), %s235_s27, 1  ;;  %v1018_v3 = vld [vmem:[%s1322_s1 + $0x24] sm:$0xff] (!%p202_p3)   ;;  %v1022_v5 = vld [vmem:[%s1322_s1 + $0x2c] sm:$0xff] (!%p202_p3)   ;;  %v1016_v6 = vld [vmem:[%s1322_s1 + $0x18] sm:$0xff] (!%p202_p3)   ;;  %vm317_vm1 = vcmask (!%p202_p3), 1043456   ;;  %vm313_vm2 = vcmask (!%p202_p3), 588800  }
   0xb   : > { %873 = vmatpush3.bf16.msra.mxu0 (!%p202_p3), %v1013_v0  ;;  %882 = vmatprep.mubr.msk.bf16.mxu0 (!%p202_p3), %vm1074_vm0, %v1073_v1  ;;  %v1024_v7 = vld [vmem:[%s1322_s1 + $0x34] sm:$0xff] (!%p202_p3)   ;;  %v1017_v8 = vld [vmem:[%s1322_s1 + $0x20] ss:$0 sps:$4 sm:$0xff] (!%p202_p3)   ;;  %v1028_v12 = vld [vmem:[%s1322_s1 + $0x44] ss:$0 sps:$4 sm:$0xff] (!%p202_p3)   ;;  %vm449_vm4 = vcmask (!%p202_p3), 1046528  }
   0xc   : > { %874 = vmatprep.subr.bf16.mxu0 (!%p202_p3), %v1073_v1  ;;  %868 = vmatprep.mubr.msk.bf16.mxu1 (!%p202_p3), %vm1074_vm0, %v1073_v1  ;;  %v1026_v11 = vld [vmem:[%s1322_s1 + $0x3c] sm:$0xff] (!%p202_p3)   ;;  %v392_v13 = vsel (!%p202_p3), %vm317_vm1, %v1017_v8, 0  ;;  %v1021_v19 = vld [vmem:[%s1322_s1 + $0x48] sm:$0xff] (!%p202_p3)   ;;  %v319_v20 = vsel (!%p202_p3), %vm317_vm1, %v1028_v12, 0  ;;  %vm273_vm3 = vsmask.f32 (!%p202_p3), 7424 }
   0xd   : > { %859 = vmatpush3.bf16.msra.mxu1 (!%p202_p3), %v1018_v3  ;;  %v1023_v24 = vld [vmem:[%s1322_s1 + $0x50] sm:$0xff] (!%p202_p3)   ;;  %v1025_v26 = vld [vmem:[%s1322_s1 + $0x58] sm:$0xff] (!%p202_p3)   ;;  %v1027_v29 = vld [vmem:[%s1322_s1 + $0x60] sm:$0xff] (!%p202_p3)   ;;  %p529_p7 = scmp.eq.s32.totalorder (!%p202_p3), %s1059_s19, 0  ;;  %p530_p8 = scmp.eq.s32.totalorder (!%p202_p3), %s1055_s18, 0 }
   0xe   : > { %860 = vmatprep.subr.bf16.mxu1 (!%p202_p3), %v1073_v1  ;;  %v1030_v30 = vld [vmem:[%s1322_s1 + $0x68] ss:$0 sps:$4 sm:$0xff] (!%p202_p3)  }
   0xf   : > { %875 = vmatpush3.bf16.msra.mxu0 (!%p202_p3), %v1014_v2  ;;  %v484_v33 = vsel (!%p202_p3), %vm317_vm1, %v1030_v30, 0  ;;  %p531_p9 = pnand (!%p202_p3), %p530_p8, %p529_p7 }
  0x10   : > { %s1338_s27 = smov (!%p236_p5, %s235_s27), 1  ;;  %876 = vmatprep.subr.bf16.mxu0 %v1073_v1  ;;  %v1075_v45 = vmov (!%p531_p9), 0.0  }
  0x11   : > { %s822_s9 = sshll.u32 %s1338_s27, 4  ;;  %861 = vmatpush3.bf16.msra.mxu1 %v1022_v5  ;;  %535 = vst [vmem:[#allocation2] sm:$0x3] (!%p531_p9), %v1075_v45 }
  0x12   : > { %s1170_s12 = scalar_lea.vmem %s1326_s5, %s822_s9  ;;  %862 = vmatprep.subr.bf16.mxu1 %v1073_v1 }
  0x13   : > { %s231_s13 = scalar_select %p230_p6, %s1055_s18, 1  ;;  %877 = vmatpush3.bf16.msra.mxu0 %v1015_v4 }
  0x14   : > { %878 = vmatprep.subr.bf16.mxu0 %v1073_v1 }
  0x15   : > { %s965_s25 = smul.u32 12, %s231_s13  ;;  %863 = vmatpush3.bf16.msra.mxu1 %v1024_v7 }
  0x16   : > { %864 = vmatprep.subr.bf16.mxu1 %v1073_v1 }
  0x17   : > { %s1191_s7 = scalar_lea.vmem %s1321_s0, %s965_s25  ;;  %879 = vmatpush3.bf16.msra.mxu0 %v1016_v6 }
  0x18   : > { %v243_v9 = vld [vmem:[%s1191_s7] sm:$0xf]  ;;  %v244_v10 = vld [vmem:[%s1191_s7 + $0x4] sm:$0xf]  ;;  %880 = vmatprep.subr.bf16.mxu0 %v1073_v1 }
  0x19   : > { %v788_v14 = vcombine.low %v243_v9, %v244_v10  ;;  %v1029_v15 = vld [vmem:[%s1191_s7 + $0x8] ss:$0 sps:$4 sm:$0x11]   ;;  %865 = vmatpush3.bf16.msra.mxu1 %v1026_v11  ;;  %v435_v27 = vld [vmem:[%s1191_s7] sm:$0xe] }
  0x1a   : > { %v282_v18 = vshll.u32 %v1029_v15, 16  ;;  %866 = vmatprep.subr.bf16.mxu1 %v1073_v1  ;;  %v811_v28 = vcombine.low %v435_v27, %v244_v10  ;;  %v451_v32 = vrot.slane %v1029_v15, 1 }
  0x1b   : > { %v275_v16 = vshrl.u32 %v788_v14, 16  ;;  %v277_v17 = vshll.u32 %v788_v14, 16  ;;  %881 = vmatpush3.bf16.msra.mxu0 %v392_v13 }
  0x1c   : > { %886 = vmatprep.subr.bf16.mxu0 %v1073_v1  ;;  %v284_v22 = vrot.slane %v282_v18, 1  ;;  %v450_v31 = vrot.slane %v811_v28, 1 }
  0x1d   : > { %v279_v21 = vrot.slane %v277_v17, 1  ;;  %867 = vmatpush3.bf16.msra.mxu1 %v319_v20 }
  0x1e   : > { %883 = vmatmul.mubr.msk.bf16.vlgmr.msra.gmra.mrb[0].mxu0 %vm313_vm2, %v788_v14  ;;  %v452_v34 = vsel %vm449_vm4, %v450_v31, %v451_v32 }
  0x1f   : > { %v280_v23 = vor.u32 %v279_v21, %v275_v16  ;;  %887 = vmatpush3.bf16.msra.mxu0 %v1021_v19  ;;  %896 = vmatprep.mubr.msk.bf16.mxu0 %vm1074_vm0, %v1073_v1 }
  0x20   : > { %888 = vmatprep.subr.bf16.mxu0 %v1073_v1 }
  0x21   : > { %v285_v25 = vsel %vm273_vm3, %v280_v23, %v284_v22 }
  0x22   : > { %869 = vmatmul.mubr.msk.bf16.vlgmr.msra.gmra.mrb[0].mxu1 %vm313_vm2, %v285_v25 }
  0x23   : > { %889 = vmatpush3.bf16.msra.mxu0 %v1023_v24 }
  0x24   : > { %890 = vmatprep.subr.bf16.mxu0 %v1073_v1 }
  0x27   : > { %891 = vmatpush3.bf16.msra.mxu0 %v1025_v26 }
  0x28   : > { %892 = vmatprep.subr.bf16.mxu0 %v1073_v1 }
  0x2b   : > { %893 = vmatpush3.bf16.msra.mxu0 %v1027_v29 }
  0x2c   : > { %894 = vmatprep.subr.bf16.mxu0 %v1073_v1 }
  0x2f   : > { %895 = vmatpush3.bf16.msra.mxu0 %v484_v33 }
  0x32   : > { %897 = vmatmul.mubr.msk.bf16.vlgmr.msra.gmra.mrb[0].mxu0 %vm313_vm2, %v452_v34 }
  0xf5   : > { %v355_v35 = vpop.f32.mrb[0].mxu1 }
  0xf6   : > { %v870_v36 = vpop.f32.mrb[1].mxu1 }
  0xf7   : > { %v358_v37 = vpop.f32.mrb[2].mxu1 }
  0xf8   : > { %v871_v38 = vpop.f32.mrb[3].mxu1 }
 0x102   : > { %534 = sbr.rel (%p531_p9) target bundleno = 265 (0x109), region = 44 }
 0x105   : > { %v520_v39 = vpop.f32.mrb[0].mxu0 }
 0x106   : > { %v1236_v40 = vadd.f32 %v520_v39, %v355_v35  ;;  %v898_v41 = vpop.f32.mrb[1].mxu0 }
 0x107   : > { %v523_v42 = vpop.f32.mrb[2].mxu0 }
 0x108   : > { %v1238_v43 = vadd.f32 %v523_v42, %v358_v37  ;;  %v899_v44 = vpop.f32.mrb[3].mxu0 }
 0x109 PF: > { %p818_p10 = scmp.ne.s32.totalorder %s1059_s19, 0 }
 0x10a   : > { %v540_v46 = vadd.f32 (!%p818_p10), %v1238_v43, %v1236_v40  ;;  %v547_v47 = vmul.f32 (!%p818_p10), %v1236_v40, %v1236_v40  ;;  %v548_v48 = vmul.f32 (!%p818_p10), %v1238_v43, %v1238_v43  ;;  %vm556_vm5 = vcmask (!%p818_p10), 1040384   ;;  %v539_v61 = vld [vmem:[#allocation2] sm:$0x3] (!%p818_p10) }
 0x10b   : > { %538 = sbr.rel (%p818_p10) target bundleno = 286 (0x11e), region = 48 }
 0x10c   : > { %v541_v49 = vrot.slane (!%p818_p10), %v540_v46, 4  ;;  %v549_v50 = vadd.f32 (!%p818_p10), %v548_v48, %v547_v47 }
 0x10e   : > { %v542_v51 = vadd.f32 (!%p818_p10), %v541_v49, %v540_v46  ;;  %v550_v52 = vrot.slane (!%p818_p10), %v549_v50, 4 }
 0x110   : > { %v543_v53 = vrot.slane (!%p818_p10), %v542_v51, 2  ;;  %v551_v54 = vadd.f32 (!%p818_p10), %v550_v52, %v549_v50 }
 0x112   : > { %v544_v55 = vadd.f32 %v543_v53, %v542_v51  ;;  %v552_v56 = vrot.slane %v551_v54, 2 }
 0x114   : > { %v545_v57 = vrot.slane %v544_v55, 1  ;;  %v553_v58 = vadd.f32 %v552_v56, %v551_v54 }
 0x116   : > { %v546_v59 = vadd.f32 %v545_v57, %v544_v55  ;;  %v554_v60 = vrot.slane %v553_v58, 1 }
 0x118   : > { %v555_v62 = vadd.f32 %v554_v60, %v553_v58 }
 0x11a   : > { %v557_v63 = vsel %vm556_vm5, %v546_v59, %v555_v62 }
 0x11b   : > { %v558_v0 = vadd.f32 %v557_v63, %v539_v61 }
 0x11d   : > { %559 = vst [vmem:[#allocation2] sm:$0x3] %v558_v0 }
 0x11e PF: > { %p819_p11 = scmp.ne.s32.totalorder %s1059_s19, 1 }
 0x11f   : > { %v565_v1 = vld [vmem:[%s1323_s2] sm:$0xff] (!%p819_p11)  ;;  %v566_v2 = vld [vmem:[%s1323_s2 + $0x8] sm:$0xff] (!%p819_p11)  ;;  %v567_v3 = vld [vmem:[%s1323_s2 + $0x10] sm:$0xff] (!%p819_p11)  ;;  %v1076_v4 = vmov (!%p819_p11), 0.0|0.0   ;;  %vm1077_vm6 = vmmov (!%p819_p11), 0   ;;  %v1078_v7 = vmov (!%p819_p11), 0.0   ;;  %v664_v37 = vlaneseq (!%p819_p11) }
 0x120   : > { %563 = sbr.rel (%p819_p11) target bundleno = 573 (0x23d), region = 52  ;;  %935 = vmatprep.subr.bf16.mxu0 (!%p819_p11), %v1076_v4  ;;  %v936_v5 = vpack.c.bf16 (!%p819_p11), %v566_v2, %v565_v1  ;;  %v568_v6 = vld [vmem:[%s1323_s2 + $0x18] sm:$0xff] (!%p819_p11)  ;;  %932 = vmatprep.mubr.msk.f32.mxu0 (!%p819_p11), %vm1077_vm6, %v1078_v7  ;;  %v569_v9 = vld [vmem:[%s1323_s2 + $0x20] sm:$0xff] (!%p819_p11)  ;;  %v570_v10 = vld [vmem:[%s1323_s2 + $0x28] sm:$0xff] (!%p819_p11)  ;;  %v1079_v35 = vmov (!%p819_p11), 1966171168  }
 0x121   : > { %v939_v8 = vpack.c.bf16 (!%p819_p11), %v568_v6, %v567_v3  ;;  %v942_v11 = vpack.c.bf16 (!%p819_p11), %v570_v10, %v569_v9  ;;  %v571_v12 = vld [vmem:[%s1323_s2 + $0x30] sm:$0xff] (!%p819_p11)  ;;  %v572_v13 = vld [vmem:[%s1323_s2 + $0x38] sm:$0xff] (!%p819_p11)  ;;  %v573_v15 = vld [vmem:[%s1323_s2 + $0x40] sm:$0xff] (!%p819_p11)  ;;  %v662_v36 = vunpack.c.l.s4 (!%p819_p11), %v1079_v35  ;;  %v665_v39 = vshrl.u32 (!%p819_p11), %v664_v37, 7 }
 0x122   : > { %937 = vmatpush3.bf16.msra.mxu0 (!%p819_p11), %v936_v5  ;;  %v945_v14 = vpack.c.bf16 (!%p819_p11), %v572_v13, %v571_v12  ;;  %v574_v16 = vld [vmem:[%s1323_s2 + $0x48] sm:$0xff] (!%p819_p11)  ;;  %v575_v18 = vld [vmem:[%s1323_s2 + $0x50] sm:$0xff] (!%p819_p11)  ;;  %v576_v19 = vld [vmem:[%s1323_s2 + $0x58] sm:$0xff] (!%p819_p11) }
 0x123   : > { %938 = vmatprep.subr.bf16.mxu0 (!%p819_p11), %v1076_v4  ;;  %v948_v17 = vpack.c.bf16 (!%p819_p11), %v574_v16, %v573_v15  ;;  %v951_v20 = vpack.c.bf16 (!%p819_p11), %v576_v19, %v575_v18  ;;  %v577_v21 = vld [vmem:[%s1323_s2 + $0x60] sm:$0xff] (!%p819_p11)  ;;  %v578_v22 = vld [vmem:[%s1323_s2 + $0x68] sm:$0xff] (!%p819_p11)  ;;  %v579_v24 = vld [vmem:[%s1323_s2 + $0x70] sm:$0xff] (!%p819_p11)  ;;  %v663_v38 = vunpack.c.0.s8 (!%p819_p11), %v662_v36  ;;  %v684_v48 = vsub.s32 (!%p819_p11), 0, %v665_v39 }
 0x124   : > { %v954_v23 = vpack.c.bf16 (!%p819_p11), %v578_v22, %v577_v21  ;;  %v580_v25 = vld [vmem:[%s1323_s2 + $0x78] sm:$0xff] (!%p819_p11)  ;;  %v564_v27 = vld [vmem:[#allocation2] sm:$0x3] (!%p819_p11) }
 0x125   : > { %v957_v26 = vpack.c.bf16 (!%p819_p11), %v580_v25, %v579_v24  ;;  %v666_v41 = vsub.s32 (!%p819_p11), %v663_v38, %v665_v39  ;;  %v659_v46 = vld [vmem:[%s1324_s3] sm:$0x1] (!%p819_p11) }
 0x126   : > { %940 = vmatpush3.bf16.msra.mxu0 (!%p819_p11), %v939_v8  ;;  %v678_v50 = vld [vmem:[%s1325_s4] sm:$0x1] (!%p819_p11) }
 0x127   : > { %941 = vmatprep.subr.bf16.mxu0 %v1076_v4 }
 0x12a   : > { %943 = vmatpush3.bf16.msra.mxu0 %v942_v11 }
 0x12b   : > { %944 = vmatprep.subr.bf16.mxu0 %v1076_v4 }
 0x12e   : > { %946 = vmatpush3.bf16.msra.mxu0 %v945_v14 }
 0x12f   : > { %947 = vmatprep.subr.bf16.mxu0 %v1076_v4 }
 0x132   : > { %949 = vmatpush3.bf16.msra.mxu0 %v948_v17 }
 0x133   : > { %950 = vmatprep.subr.bf16.mxu0 %v1076_v4 }
 0x136   : > { %952 = vmatpush3.bf16.msra.mxu0 %v951_v20 }
 0x137   : > { %953 = vmatprep.subr.bf16.mxu0 %v1076_v4 }
 0x13a   : > { %955 = vmatpush3.bf16.msra.mxu0 %v954_v23 }
 0x13b   : > { %956 = vmatprep.subr.bf16.mxu0 %v1076_v4 }
 0x13e   : > { %958 = vmatpush3.bf16.msra.mxu0 %v957_v26 }
 0x141   : > { %933 = vmatmul.mubr.f32.vlgmr.msra.gmra.mrb[0].mxu0 %v564_v27 }
 0x214   : > { %v647_v28 = vpop.f32.mrb[0].mxu0 }
 0x215   : > { %v651_v29 = vmul.f32 0.001953125, %v647_v28  ;;  %v934_v30 = vpop.f32.mrb[1].mxu0 }
 0x217   : > { %v652_v31 = vmul.f32 %v651_v29, %v651_v29 }
 0x219   : > { %v654_v32 = vrot.slane %v652_v31, 7 }
 0x21b   : > { %v656_v33 = vsub.f32 %v651_v29, %v654_v32 }
 0x21d   : > { %v657_v34 = vadd.f32 1e-05, %v656_v33 }
 0x21f   : > { %1031 = vrsqrt.f32 %v657_v34 }
 0x229   : > { %v1032_v42 = vpop.eup %1031 }
 0x22a   : > { %v667_v44 = vrot.slane %v1032_v42, %v666_v41 }
 0x22c   : > { %v668_v45 = vcombine.high %v667_v44, %v667_v44 }
 0x22e   : > { %v675_v47 = vrot.slane %v668_v45, %v666_v41 }
 0x230   : > { %v677_v49 = vmul.f32 %v675_v47, %v659_v46 }
 0x232   : > { %v679_v51 = vmul.f32 %v677_v49, %v651_v29  ;;  %v685_v52 = vrot.slane %v677_v49, %v684_v48 }
 0x234   : > { %v680_v53 = vsub.f32 %v678_v50, %v679_v51  ;;  %v687_v54 = vmul.f32 %v1236_v40, %v685_v52  ;;  %v688_v55 = vmul.f32 %v1238_v43, %v685_v52 }
 0x236   : > { %v693_v56 = vrot.slane %v680_v53, %v684_v48 }
 0x238   : > { %v695_v57 = vadd.f32 %v693_v56, %v687_v54  ;;  %v696_v58 = vadd.f32 %v693_v56, %v688_v55 }
 0x23a   : > { %v697_v59 = vmax.f32 %v695_v57, 0.0  ;;  %v698_v60 = vmax.f32 %v696_v58, 0.0 }
 0x23c   : > { %699 = vst [vmem:[%s1170_s12] sm:$0xff] %v697_v59  ;;  %700 = vst [vmem:[%s1170_s12 + $0x8] sm:$0xff] %v698_v60 }
 0x23d PF: > { %s15_s22 = sadd.s32 1, %s1071_s22   ;;  %s1327_s18 = smov %s1063_s20 }
 0x23e   : > { %p12_p12 = scmp.ge.s32.totalorder %s15_s22, 6   ;;  %s1328_s19 = smov %s1067_s21 }
 0x23f   : > { %s1329_s20 = smov %s1332_s23  ;;  %s1330_s21 = smov %s1336_s24 }
 0x240   :  { %14 = sbr.rel (!%p12_p12) target bundleno = 3 (0x3), region = 84 }

</bundles_post_ra>
